<compile_context>
chip_gen: v6e
topology: v6e:2x2x1
jax: 0.10.0
libtpu: 0.0.40
codegen_flags: <defaults>
</compile_context>

<pallas_src>
import functools
import math

import jax
import jax.numpy as jnp
from jax.experimental import pallas as pl
from jax.experimental.pallas import tpu as pltpu


def _round_up(x, m):
    return ((x + m - 1) // m) * m


def _tpu_vmem_capacity_bytes():
    """Per-TensorCore VMEM capacity; conservative 64 MiB (v7x) fallback."""
    try:
        cap = int(pltpu.get_tpu_info().vmem_capacity_bytes)
        if cap > 0:
            return cap
    except Exception:
        pass
    return 64 << 20


def _resident_spec(block_shape, index_map):
    """BlockSpec for grid-invariant inputs: constant index_map => a single VMEM
    buffer suffices (default double-buffering would waste VMEM for zero benefit).
    Falls back to the default spec if this Pallas version lacks pipeline_mode."""
    try:
        return pl.BlockSpec(block_shape, index_map, pipeline_mode=pl.Buffered(1))
    except Exception:
        return pl.BlockSpec(block_shape, index_map)


def _grouped_layer_norm(nxt, seg_sum, seg_bcast, gamma, beta, inv_d, eps):
    """LayerNorm over each D-sized lane group of a lane-dense (TB, MDp) slab.

    seg_sum:   (MDp, M) one-hot group-sum matrix (zero rows for padded lanes)
    seg_bcast: (M, MDp) one-hot group-broadcast matrix (zero cols for padding)
    Uses var = E[x^2] - mean^2 (two independent reductions) and computes rsqrt
    on the small (TB, M) tile before broadcasting.
    """
    g_sum = jnp.dot(nxt, seg_sum, preferred_element_type=jnp.float32)        # (TB, M)
    g_sq = jnp.dot(nxt * nxt, seg_sum, preferred_element_type=jnp.float32)   # (TB, M)
    g_mean = g_sum * inv_d
    g_var = jnp.maximum(g_sq * inv_d - g_mean * g_mean, 0.0)
    g_rstd = jax.lax.rsqrt(g_var + eps)                                      # EUP on (TB, M)
    mean = jnp.dot(g_mean, seg_bcast, preferred_element_type=jnp.float32)    # (TB, MDp)
    rstd = jnp.dot(g_rstd, seg_bcast, preferred_element_type=jnp.float32)    # (TB, MDp)
    return (nxt - mean) * rstd * gamma + beta


def _capsule_fc_uniform_kernel(x_ref, w_ref, s_ref, p_ref, gamma_ref, beta_ref, out_ref,
                               *, inv_d, ln_eps, apply_ln):
    # x_ref: (TB, N*A) bf16; w_ref: (N*A, MDp) bf16, resident, with the uniform
    # softmax weight 1/out_n already folded in at construction.
    nxt = jnp.dot(x_ref[...], w_ref[...], preferred_element_type=jnp.float32)   # (TB, MDp)
    # TODO(synk): dropout is identity here (eval mode / dp=0.0); train-mode dropout not implemented.
    if apply_ln:
        nxt = _grouped_layer_norm(nxt, s_ref[...], p_ref[...],
                                  gamma_ref[...], beta_ref[...], inv_d, ln_eps)
    out_ref[...] = nxt.astype(out_ref.dtype)


def _capsule_fc_routing_kernel(x_ref, w_ref, ncv_ref, s_ref, p_ref, gamma_ref, beta_ref,
                               out_ref, *, scale, inv_d, ln_eps, apply_ln, unroll):
    # x_ref:   (N, TB, A)  bf16 input capsules (batch-transposed; ref[n] is a cheap
    #                      leading-dim slice, no in-kernel relayout)
    # w_ref:   (N, A, MDp) bf16 weight, resident & single-buffered
    # ncv_ref: (TB, MDp)   previous higher-level capsules (f32, zero-padded lanes)
    # s_ref:   (MDp, M)    one-hot group-sum matrix; p_ref: (M, MDp) group-broadcast
    n_in, tb, _ = x_ref.shape
    mdp = out_ref.shape[1]

    ncv = ncv_ref[...].astype(jnp.float32)             # (TB, MDp)
    s_f32 = s_ref[...]
    p_f32 = p_ref[...]
    s_lo = s_f32.astype(x_ref.dtype)                   # exact for 0/1 values

    def body(n, acc):
        # votes_n[b, k] = sum_a x[n, b, a] * w[n, a, k]  (MXU, f32 accumulation)
        votes = jnp.dot(x_ref[n], w_ref[n], preferred_element_type=jnp.float32)   # (TB, MDp)
        # routing logits: D-group reduction as a tiny one-hot matmul; bf16 LHS
        # keeps it to a single MXU pass (padded lanes contribute zero).
        prod = (votes * ncv).astype(x_ref.dtype)
        logits = scale * jnp.dot(prod, s_lo, preferred_element_type=jnp.float32)  # (TB, M)
        # softmax over output capsules m.  The reference's qk/(sum qk + 1e-10)
        # renormalization divides by 1 + O(1e-10) in f32 and is folded away.
        mx = jnp.max(logits, axis=-1, keepdims=True)
        e = jnp.exp(logits - mx)
        qk = e * pl.reciprocal(jnp.sum(e, axis=-1, keepdims=True), approx=True)    # (TB, M)
        # broadcast routing weights to the M*D lane layout (f32: qk is the
        # precision-sensitive quantity) and accumulate this capsule's vote.
        qk_full = jnp.dot(qk, p_f32, preferred_element_type=jnp.float32)           # (TB, MDp)
        return acc + qk_full * votes

    nxt = jax.lax.fori_loop(0, n_in, body,
                            jnp.zeros((tb, mdp), jnp.float32), unroll=unroll)

    # TODO(synk): dropout is identity here (eval mode / dp=0.0); train-mode dropout not implemented.
    if apply_ln:
        nxt = _grouped_layer_norm(nxt, s_f32, p_f32,
                                  gamma_ref[...], beta_ref[...], inv_d, ln_eps)
    out_ref[...] = nxt.astype(out_ref.dtype)


class CapsuleFCPallas:
    """JAX/Pallas reimplementation of CapsuleFC (matrix_pose=False, eval mode)."""

    def __init__(self, in_n_capsules, in_d_capsules, out_n_capsules, out_d_capsules,
                 matrix_pose=False, dp=0.0, key=None, compute_dtype=jnp.bfloat16):
        if matrix_pose:
            # TODO(synk): matrix_pose=True branch (sqrt_d pose-matrix einsums) not implemented.
            raise NotImplementedError("matrix_pose=True not implemented in this kernel")
        self.in_n = in_n_capsules
        self.in_d = in_d_capsules
        self.out_n = out_n_capsules
        self.out_d = out_d_capsules
        self.scale = 1.0 / out_d_capsules ** 0.5
        self.dropout_rate = dp
        self.compute_dtype = compute_dtype
        self.ln_eps = 1e-5
        self._vmem_capacity = _tpu_vmem_capacity_bytes()

        weight_init_const = math.sqrt(out_n_capsules / (in_d_capsules * in_n_capsules))
        if key is None:
            key = jax.random.PRNGKey(0)
        self.w = (weight_init_const *
                  jax.random.normal(key, (in_n_capsules, in_d_capsules,
                                          out_n_capsules, out_d_capsules),
                                    dtype=jnp.float32))
        # LayerNorm(out_d) parameters (default init: gamma=1, beta=0)
        self.gamma = jnp.ones((1, out_d_capsules), dtype=jnp.float32)
        self.beta = jnp.zeros((1, out_d_capsules), dtype=jnp.float32)

        n, a, m, d = in_n_capsules, in_d_capsules, out_n_capsules, out_d_capsules
        md = m * d
        mdp = _round_up(md, 128)            # lane-dense kernel-facing output width
        self.md, self.mdp = md, mdp
        pad = mdp - md

        # Kernel-friendly weight layouts, zero-padded to MDp, shipped in bf16
        # (MXU accumulates in f32 via preferred_element_type).
        w_flat = self.w.reshape(n * a, md) * (1.0 / m)   # uniform softmax 1/out_n folded in
        self.w_flat = jnp.pad(w_flat, ((0, 0), (0, pad))).astype(compute_dtype)
        self.w_routing = jnp.pad(self.w.reshape(n, a, md),
                                 ((0, 0), (0, 0), (0, pad))).astype(compute_dtype)

        # One-hot D-group segment matrices for lane-dense reductions / broadcasts.
        # Padded lanes (>= md) map to no group -> zero rows/cols.
        groups = jnp.arange(mdp, dtype=jnp.int32) // d
        self.seg_sum = (groups[:, None] ==
                        jnp.arange(m, dtype=jnp.int32)[None, :]).astype(jnp.float32)   # (MDp, M)
        self.seg_bcast = jnp.transpose(self.seg_sum)                                   # (M, MDp)

        # LayerNorm affine params tiled to the lane-dense (1, MDp) layout.
        self.gamma_full = jnp.pad(jnp.tile(self.gamma, (1, m)), ((0, 0), (0, pad)))
        self.beta_full = jnp.pad(jnp.tile(self.beta, (1, m)), ((0, 0), (0, pad)))

    # -- VMEM / tiling helpers ------------------------------------------------
    def _vmem_estimate(self, tb, routing):
        n, a, m, mdp = self.in_n, self.in_d, self.out_n, self.mdp
        cd = jnp.dtype(self.compute_dtype).itemsize
        resident = n * a * mdp * cd + (2 * m * mdp + 2 * mdp) * 4   # weight + seg/gamma/beta (1 buf)
        if routing:
            stream = 2 * (n * tb * a * cd) + 2 * (tb * mdp * 4) + 2 * (tb * mdp * 4)  # x, ncv, out
            work = 6 * tb * mdp * 4          # votes / prod / qk_full / acc / LN temps
        else:
            stream = 2 * (tb * n * a * cd) + 2 * (tb * mdp * 4)
            work = 4 * tb * mdp * 4
        return resident + stream + work + (2 << 20)

    def _pick_tb(self, batch, routing):
        cap = self._vmem_capacity
        budget = int(cap * 0.70)                      # leave headroom
        tb_cap = 1024 if cap >= (96 << 20) else 512   # v5e/v6e (128 MiB) vs v7x (64 MiB)
        tb = max(8, min(tb_cap, _round_up(batch, 8)))
        while tb > 8 and self._vmem_estimate(tb, routing) > budget:
            tb = max(8, ((tb // 2) // 8) * 8)
        return tb

    def _vmem_limit(self, tb, routing):
        est = self._vmem_estimate(tb, routing)
        cap = self._vmem_capacity
        return int(min(max(est + (8 << 20), 32 << 20), int(cap * 0.85)))

    # -- forward ----------------------------------------------------------------
    def __call__(self, x, num_iter=0, next_capsule_value=None):
        del num_iter  # unused by the reference forward as well
        if x.ndim == 5:
            # permute(0,4,1,2,3) -> view -> permute(0,2,1) is equivalent to this reshape
            x = x.reshape(x.shape[0], -1, x.shape[-1])
        batch = x.shape[0]
        n, a, m, d = self.in_n, self.in_d, self.out_n, self.out_d
        md, mdp = self.md, self.mdp
        routing = next_capsule_value is not None
        out_dtype = x.dtype

        tb = self._pick_tb(batch, routing)
        bp = _round_up(batch, tb)
        grid = (bp // tb,)
        if bp != batch:
            x = jnp.pad(x, ((0, bp - batch), (0, 0), (0, 0)))

        # TODO(synk): on v7x (2 TensorCores/chip) verify in the trace that the batch
        # axis is split across cores; if not, switch this axis to pltpu.CORE_PARALLEL.
        compiler_params = pltpu.CompilerParams(
            dimension_semantics=("parallel",),
            vmem_limit_bytes=self._vmem_limit(tb, routing))

        if routing:
            ncv = next_capsule_value.reshape(
                next_capsule_value.shape[0], md).astype(jnp.float32)
            ncv = jnp.pad(ncv, ((0, bp - batch), (0, mdp - md)))
            # batch-transposed bf16 activations: the per-n loop slices the leading dim
            # (cheap ref[n]); transpose fused with the bf16 cast in one XLA pass.
            x_t = jnp.transpose(x, (1, 0, 2)).astype(self.compute_dtype)   # (N, Bp, A)
            kernel = functools.partial(
                _capsule_fc_routing_kernel, scale=self.scale, inv_d=1.0 / d,
                ln_eps=self.ln_eps, apply_ln=(d != 1), unroll=(n <= 32))
            out = pl.pallas_call(
                kernel,
                out_shape=jax.ShapeDtypeStruct((bp, mdp), out_dtype),
                grid_spec=pltpu.PrefetchScalarGridSpec(
                    num_scalar_prefetch=0, grid=grid,
                    in_specs=[
                        pl.BlockSpec((n, tb, a), lambda b: (0, b, 0)),     # x (transposed)
                        _resident_spec((n, a, mdp), lambda b: (0, 0, 0)),  # weight (resident, 1 buf)
                        pl.BlockSpec((tb, mdp), lambda b: (b, 0)),         # ncv
                        _resident_spec((mdp, m), lambda b: (0, 0)),        # seg_sum
                        _resident_spec((m, mdp), lambda b: (0, 0)),        # seg_bcast
                        _resident_spec((1, mdp), lambda b: (0, 0)),        # gamma
                        _resident_spec((1, mdp), lambda b: (0, 0)),        # beta
                    ],
                    out_specs=pl.BlockSpec((tb, mdp), lambda b: (b, 0))),
                compiler_params=compiler_params,
            )(x_t, self.w_routing, ncv, self.seg_sum, self.seg_bcast,
              self.gamma_full, self.beta_full)
        else:
            x_flat = x.reshape(bp, n * a).astype(self.compute_dtype)
            kernel = functools.partial(
                _capsule_fc_uniform_kernel, inv_d=1.0 / d,
                ln_eps=self.ln_eps, apply_ln=(d != 1))
            out = pl.pallas_call(
                kernel,
                out_shape=jax.ShapeDtypeStruct((bp, mdp), out_dtype),
                grid_spec=pltpu.PrefetchScalarGridSpec(
                    num_scalar_prefetch=0, grid=grid,
                    in_specs=[
                        pl.BlockSpec((tb, n * a), lambda b: (b, 0)),       # x (lane-dense)
                        _resident_spec((n * a, mdp), lambda b: (0, 0)),    # weight (resident, 1 buf)
                        _resident_spec((mdp, m), lambda b: (0, 0)),        # seg_sum
                        _resident_spec((m, mdp), lambda b: (0, 0)),        # seg_bcast
                        _resident_spec((1, mdp), lambda b: (0, 0)),        # gamma
                        _resident_spec((1, mdp), lambda b: (0, 0)),        # beta
                    ],
                    out_specs=pl.BlockSpec((tb, mdp), lambda b: (b, 0))),
                compiler_params=compiler_params,
            )(x_flat, self.w_flat, self.seg_sum, self.seg_bcast,
              self.gamma_full, self.beta_full)

        return out[:batch, :md].reshape(batch, m, d)


def capsule_fc_reference(x, w, gamma, beta, scale, next_capsule_value=None, eps=1e-5):
    """Pure-JAX reference mirroring the PyTorch forward (matrix_pose=False, eval)."""
    if x.ndim == 5:
        x = x.reshape(x.shape[0], -1, x.shape[-1])
    n, _, m, d = w.shape
    hi = jax.lax.Precision.HIGHEST
    if next_capsule_value is None:
        qk = jax.nn.softmax(jnp.zeros((n, m), x.dtype), axis=1)
        nxt = jnp.einsum('nm,bna,namd->bmd', qk, x, w, precision=hi)
    else:
        ncv = next_capsule_value.reshape(next_capsule_value.shape[0], m, d)
        qk = jnp.einsum('bna,namd,bmd->bnm', x, w, ncv, precision=hi) * scale
        qk = jax.nn.softmax(qk, axis=2)
        qk = qk / (jnp.sum(qk, axis=2, keepdims=True) + 1e-10)
        nxt = jnp.einsum('bnm,bna,namd->bmd', qk, x, w, precision=hi)
    if d != 1:
        mean = nxt.mean(-1, keepdims=True)
        var = ((nxt - mean) ** 2).mean(-1, keepdims=True)
        nxt = (nxt - mean) / jnp.sqrt(var + eps) * gamma[0] + beta[0]
    return nxt


if __name__ == "__main__":
    # Small shapes consistent with the module: batch 2, 8 input capsules of dim 16
    # -> 4 output capsules of dim 16  (N*A = 128; M*D = 64 padded to 128 lanes).
    B, in_n, in_d, out_n, out_d = 2, 8, 16, 4, 16

    key = jax.random.PRNGKey(0)
    k_w, k_x = jax.random.split(key)

    layer = CapsuleFCPallas(in_n, in_d, out_n, out_d, matrix_pose=False, dp=0.0, key=k_w)
    x = jax.random.normal(k_x, (B, in_n, in_d), dtype=jnp.float32)

    # Iteration 0: no previous higher-level capsules (uniform routing).
    out0 = jax.block_until_ready(layer(x, num_iter=0, next_capsule_value=None))
    # Iteration 1: dot-product attention routing against the previous output.
    out1 = jax.block_until_ready(layer(x, num_iter=1, next_capsule_value=out0))

    # 5-D input path (B, s1, s2, s3, A) must match the flattened 3-D path.
    x5 = x.reshape(B, 2, 2, 2, in_d)
    out0_5d = jax.block_until_ready(layer(x5, num_iter=0, next_capsule_value=None))
    err5 = float(jnp.max(jnp.abs(out0_5d - out0)))
    assert err5 < 1e-6, ("5D input path mismatch", err5)

    # (1) Check vs a reference using the same bf16-rounded MXU operands.  Tolerance
    #     covers the intentional in-kernel deviations: bf16 rounding of the
    #     logits-reduction operand, approx EUP reciprocal in the softmax, and the
    #     folded-away qk/(sum+1e-10) renormalization.
    xq = x.astype(jnp.bfloat16).astype(jnp.float32)
    wq = layer.w.astype(jnp.bfloat16).astype(jnp.float32)
    ref0_q = capsule_fc_reference(xq, wq, layer.gamma, layer.beta, layer.scale, None)
    ref1_q = capsule_fc_reference(xq, wq, layer.gamma, layer.beta, layer.scale, out0)
    err0 = float(jnp.max(jnp.abs(out0 - ref0_q)))
    err1 = float(jnp.max(jnp.abs(out1 - ref1_q)))
    assert err0 < 1.5e-2 and err1 < 1.5e-2, ("matched-precision check failed", err0, err1)

    # (2) Looser check vs the full-f32 reference (slack = bf16 operand quantization,
    #     amplified by the LayerNorm normalization).
    ref0_f = capsule_fc_reference(x, layer.w, layer.gamma, layer.beta, layer.scale, None)
    ref1_f = capsule_fc_reference(x, layer.w, layer.gamma, layer.beta, layer.scale, out0)
    err0_f = float(jnp.max(jnp.abs(out0 - ref0_f)))
    err1_f = float(jnp.max(jnp.abs(out1 - ref1_f)))
    assert err0_f < 1.5e-1 and err1_f < 1.5e-1, ("f32 reference check failed", err0_f, err1_f)

    print("KERNEL_OK")
</pallas_src>

<mosaic_0001>
module attributes {stable_mosaic.version = 11 : i64} {
  func.func @_capsule_fc_uniform_kernel(%arg0: i32, %arg1: memref<8x128xbf16, #tpu.memory_space<vmem>>, %arg2: memref<128x128xbf16, #tpu.memory_space<vmem>>, %arg3: memref<128x4xf32, #tpu.memory_space<vmem>>, %arg4: memref<4x128xf32, #tpu.memory_space<vmem>>, %arg5: memref<1x128xf32, #tpu.memory_space<vmem>>, %arg6: memref<1x128xf32, #tpu.memory_space<vmem>>, %arg7: memref<8x128xf32, #tpu.memory_space<vmem>>) attributes {dimension_semantics = [#tpu.dimension_semantics<parallel>], iteration_bounds = array<i64: 1>, scalar_prefetch = 0 : i64, scratch_operands = 0 : i64, tpu.core_type = #tpu.core_type<tc>, window_params = [{transform_indices = @transform_0, window_bounds = array<i64: 8, 128>}, {pipeline_mode = #tpu.pipeline_mode<synchronous>, transform_indices = @transform_1, window_bounds = array<i64: 128, 128>}, {pipeline_mode = #tpu.pipeline_mode<synchronous>, transform_indices = @transform_2, window_bounds = array<i64: 128, 4>}, {pipeline_mode = #tpu.pipeline_mode<synchronous>, transform_indices = @transform_3, window_bounds = array<i64: 4, 128>}, {pipeline_mode = #tpu.pipeline_mode<synchronous>, transform_indices = @transform_4, window_bounds = array<i64: 1, 128>}, {pipeline_mode = #tpu.pipeline_mode<synchronous>, transform_indices = @transform_5, window_bounds = array<i64: 1, 128>}, {transform_indices = @transform_6, window_bounds = array<i64: 8, 128>}]} {
    %c0 = arith.constant 0 : index
    %c0_0 = arith.constant 0 : index
    %0 = vector.load %arg1[%c0, %c0_0] : memref<8x128xbf16, #tpu.memory_space<vmem>>, vector<8x128xbf16>
    %c0_1 = arith.constant 0 : index
    %c0_2 = arith.constant 0 : index
    %1 = vector.load %arg2[%c0_1, %c0_2] : memref<128x128xbf16, #tpu.memory_space<vmem>>, vector<128x128xbf16>
    %cst = arith.constant dense<0.000000e+00> : vector<8x128xf32>
    %2 = tpu.matmul %0, %1, %cst {dimension_numbers = #tpu.dot_dimension_numbers<[1], [0], [0], [1], [0, 0, 1, 1], [], []>} : vector<8x128xbf16>, vector<128x128xbf16>, vector<8x128xf32> -> vector<8x128xf32>
    %c0_3 = arith.constant 0 : index
    %c0_4 = arith.constant 0 : index
    %3 = vector.load %arg3[%c0_3, %c0_4] : memref<128x4xf32, #tpu.memory_space<vmem>>, vector<128x4xf32>
    %c0_5 = arith.constant 0 : index
    %c0_6 = arith.constant 0 : index
    %4 = vector.load %arg4[%c0_5, %c0_6] : memref<4x128xf32, #tpu.memory_space<vmem>>, vector<4x128xf32>
    %c0_7 = arith.constant 0 : index
    %c0_8 = arith.constant 0 : index
    %5 = vector.load %arg5[%c0_7, %c0_8] : memref<1x128xf32, #tpu.memory_space<vmem>>, vector<1x128xf32>
    %c0_9 = arith.constant 0 : index
    %c0_10 = arith.constant 0 : index
    %6 = vector.load %arg6[%c0_9, %c0_10] : memref<1x128xf32, #tpu.memory_space<vmem>>, vector<1x128xf32>
    %cst_11 = arith.constant dense<0.000000e+00> : vector<8x4xf32>
    %7 = tpu.matmul %2, %3, %cst_11 {dimension_numbers = #tpu.dot_dimension_numbers<[1], [0], [0], [1], [0, 0, 1, 1], [], []>} : vector<8x128xf32>, vector<128x4xf32>, vector<8x4xf32> -> vector<8x4xf32>
    %8 = arith.mulf %2, %2 : vector<8x128xf32>
    %cst_12 = arith.constant dense<0.000000e+00> : vector<8x4xf32>
    %9 = tpu.matmul %8, %3, %cst_12 {dimension_numbers = #tpu.dot_dimension_numbers<[1], [0], [0], [1], [0, 0, 1, 1], [], []>} : vector<8x128xf32>, vector<128x4xf32>, vector<8x4xf32> -> vector<8x4xf32>
    %cst_13 = arith.constant 6.250000e-02 : f32
    %10 = vector.broadcast %cst_13 : f32 to vector<8x4xf32>
    %11 = arith.mulf %7, %10 : vector<8x4xf32>
    %cst_14 = arith.constant 6.250000e-02 : f32
    %12 = vector.broadcast %cst_14 : f32 to vector<8x4xf32>
    %13 = arith.mulf %9, %12 : vector<8x4xf32>
    %14 = arith.mulf %11, %11 : vector<8x4xf32>
    %15 = arith.subf %13, %14 : vector<8x4xf32>
    %cst_15 = arith.constant 0.000000e+00 : f32
    %16 = vector.broadcast %cst_15 : f32 to vector<8x4xf32>
    %17 = arith.maximumf %15, %16 : vector<8x4xf32>
    %cst_16 = arith.constant 9.99999974E-6 : f32
    %18 = vector.broadcast %cst_16 : f32 to vector<8x4xf32>
    %19 = arith.addf %17, %18 : vector<8x4xf32>
    %20 = math.rsqrt %19 : vector<8x4xf32>
    %cst_17 = arith.constant dense<0.000000e+00> : vector<8x128xf32>
    %21 = tpu.matmul %11, %4, %cst_17 {dimension_numbers = #tpu.dot_dimension_numbers<[1], [0], [0], [1], [0, 0, 1, 1], [], []>} : vector<8x4xf32>, vector<4x128xf32>, vector<8x128xf32> -> vector<8x128xf32>
    %cst_18 = arith.constant dense<0.000000e+00> : vector<8x128xf32>
    %22 = tpu.matmul %20, %4, %cst_18 {dimension_numbers = #tpu.dot_dimension_numbers<[1], [0], [0], [1], [0, 0, 1, 1], [], []>} : vector<8x4xf32>, vector<4x128xf32>, vector<8x128xf32> -> vector<8x128xf32>
    %23 = arith.subf %2, %21 : vector<8x128xf32>
    %24 = arith.mulf %23, %22 : vector<8x128xf32>
    %25 = vector.broadcast %5 : vector<1x128xf32> to vector<8x128xf32>
    %26 = arith.mulf %24, %25 : vector<8x128xf32>
    %27 = vector.broadcast %6 : vector<1x128xf32> to vector<8x128xf32>
    %28 = arith.addf %26, %27 : vector<8x128xf32>
    %c0_19 = arith.constant 0 : index
    %c0_20 = arith.constant 0 : index
    %29 = vector.load %arg7[%c0_19, %c0_20] : memref<8x128xf32, #tpu.memory_space<vmem>>, vector<8x128xf32>
    tpu.vector_store %arg7[%c0_19, %c0_20], %28 {strides = array<i32>} : memref<8x128xf32, #tpu.memory_space<vmem>>, vector<8x128xf32>,
    return
  }
  func.func @transform_0(%arg0: i32) -> (i32, i32) {
    %c0_i32 = arith.constant 0 : i32
    %c0_i32_0 = arith.constant 0 : i32
    return %arg0, %c0_i32 : i32, i32
  }
  func.func @transform_1(%arg0: i32) -> (i32, i32) {
    %c0_i32 = arith.constant 0 : i32
    %c0_i32_0 = arith.constant 0 : i32
    %c0_i32_1 = arith.constant 0 : i32
    return %c0_i32, %c0_i32_0 : i32, i32
  }
  func.func @transform_2(%arg0: i32) -> (i32, i32) {
    %c0_i32 = arith.constant 0 : i32
    %c0_i32_0 = arith.constant 0 : i32
    %c0_i32_1 = arith.constant 0 : i32
    return %c0_i32, %c0_i32_0 : i32, i32
  }
  func.func @transform_3(%arg0: i32) -> (i32, i32) {
    %c0_i32 = arith.constant 0 : i32
    %c0_i32_0 = arith.constant 0 : i32
    %c0_i32_1 = arith.constant 0 : i32
    return %c0_i32, %c0_i32_0 : i32, i32
  }
  func.func @transform_4(%arg0: i32) -> (i32, i32) {
    %c0_i32 = arith.constant 0 : i32
    %c0_i32_0 = arith.constant 0 : i32
    %c0_i32_1 = arith.constant 0 : i32
    return %c0_i32, %c0_i32_0 : i32, i32
  }
  func.func @transform_5(%arg0: i32) -> (i32, i32) {
    %c0_i32 = arith.constant 0 : i32
    %c0_i32_0 = arith.constant 0 : i32
    %c0_i32_1 = arith.constant 0 : i32
    return %c0_i32, %c0_i32_0 : i32, i32
  }
  func.func @transform_6(%arg0: i32) -> (i32, i32) {
    %c0_i32 = arith.constant 0 : i32
    %c0_i32_0 = arith.constant 0 : i32
    return %arg0, %c0_i32 : i32, i32
  }
}

</mosaic_0001>

<bundles_post_ra>
// kernel: tpu_custom_call.1
= control target key start
LH: loop header
LB: loop body
LE: loop exit
PB: predicated region body
PF: predicated region fallthrough
CT: control target
= control target key end

     0   :  { %v675_v1 = vmov 0.0   ;;  %vm676_vm0 = vmmov 0   ;;  %s852_s0 = inlined_call_operand.vmem [shape: bf16[8,128], index: 0, kind: input, shape index: {}]   ;;  %s853_s1 = inlined_call_operand.vmem [shape: bf16[128,128], index: 1, kind: input, shape index: {}]   ;;  %s854_s2 = inlined_call_operand.vmem [shape: f32[128,4], index: 2, kind: input, shape index: {}]   ;;  %s855_s3 = inlined_call_operand.vmem [shape: f32[4,128], index: 3, kind: input, shape index: {}]   ;;  %s856_s4 = inlined_call_operand.vmem [shape: f32[1,128], index: 4, kind: input, shape index: {}]   ;;  %s857_s5 = inlined_call_operand.vmem [shape: f32[1,128], index: 5, kind: input, shape index: {}]   ;;  %s858_s6 = inlined_call_operand.hbm [shape: f32[8,128], index: 6, kind: output, shape index: {}]  }
   0x1   :  { %v643_v0 = vld [vmem:[%s853_s1 + $0x38] sm:$0xff]   ;;  %540 = vmatprep.subr.bf16.mxu0 %v675_v1  ;;  %560 = vmatprep.subr.mxu1 %v675_v1  ;;  %v644_v2 = vld [vmem:[%s853_s1 + $0x30] sm:$0xff]   ;;  %v645_v3 = vld [vmem:[%s853_s1 + $0x28] sm:$0xff]  }
   0x2   :  { %541 = vmatpush3.bf16.msra.mxu0 %v643_v0  ;;  %556 = vmatprep.mubr.msk.bf16.mxu0 %vm676_vm0, %v675_v1  ;;  %v145_v4 = vld [vmem:[%s854_s2 + $0x78] sm:$0xff]  ;;  %v144_v5 = vld [vmem:[%s854_s2 + $0x70] sm:$0xff]  ;;  %v646_v6 = vld [vmem:[%s853_s1 + $0x20] sm:$0xff]  }
   0x3   :  { %542 = vmatprep.subr.bf16.mxu0 %v675_v1  ;;  %592 = vmatprep.mubr.msk.f32.mxu1 %vm676_vm0, %v675_v1  ;;  %v143_v7 = vld [vmem:[%s854_s2 + $0x68] sm:$0xff]  ;;  %v142_v8 = vld [vmem:[%s854_s2 + $0x60] sm:$0xff] }
   0x4   :  { %561 = vmatpush3.msra.mxu1 %v145_v4 }
   0x5   :  { %562 = vmatprep.subr.mxu1 %v675_v1 }
   0x6   :  { %543 = vmatpush3.bf16.msra.mxu0 %v644_v2  ;;  %563 = vmatpush3.msra.mxu1 %v144_v5 }
   0x7   :  { %544 = vmatprep.subr.bf16.mxu0 %v675_v1  ;;  %564 = vmatprep.subr.mxu1 %v675_v1 }
   0x8   :  { %565 = vmatpush3.msra.mxu1 %v143_v7 }
   0xa   :  { %545 = vmatpush3.bf16.msra.mxu0 %v645_v3 }
   0xb   :  { %546 = vmatprep.subr.bf16.mxu0 %v675_v1 }
   0xc   :  { %11 = vsyncpa [#allocation3], 0  ;;  %v647_v9 = vld [vmem:[%s853_s1 + $0x18] sm:$0xff]   ;;  %566 = vmatprep.subr.mxu1 %v675_v1  ;;  %v140_v11 = vld [vmem:[%s854_s2 + $0x50] sm:$0xff]  ;;  %vm301_vm1 = vcmask 1043456   ;;  %vm297_vm2 = vcmask 31744  }
   0xd   :  { %v141_v10 = vld [vmem:[%s854_s2 + $0x58] sm:$0xff]  ;;  %567 = vmatpush3.msra.mxu1 %v142_v8  ;;  %v648_v12 = vld [vmem:[%s853_s1 + $0x10] sm:$0xff]   ;;  %v139_v13 = vld [vmem:[%s854_s2 + $0x48] sm:$0xff]  ;;  %s677_s25 = smov [#allocation2]  }
   0xe   :  { %547 = vmatpush3.bf16.msra.mxu0 %v646_v6  ;;  %568 = vmatprep.subr.mxu1 %v675_v1  ;;  %v138_v14 = vld [vmem:[%s854_s2 + $0x40] sm:$0xff]  ;;  %v649_v15 = vld [vmem:[%s853_s1 + $0x8] sm:$0xff]   ;;  %v137_v16 = vld [vmem:[%s854_s2 + $0x38] sm:$0xff]  ;;  %s471_s26 = sshll.u32 %s677_s25, 4  ;;  %s472_s26 = int_to_ptr.vmem [resolvable:$true] %s471_s26 }
   0xf   :  { %548 = vmatprep.subr.bf16.mxu0 %v675_v1  ;;  %569 = vmatpush3.msra.mxu1 %v141_v10  ;;  %v136_v17 = vld [vmem:[%s854_s2 + $0x30] sm:$0xff]  ;;  %v650_v18 = vld [vmem:[%s853_s1] sm:$0xff]   ;;  %v135_v19 = vld [vmem:[%s854_s2 + $0x28] sm:$0xff]  ;;  %s653_s27 = scalar_lea.vmem %s472_s26, 128  ;;  %p658_p1 = scmp.lt.s32.totalorder %s472_s26, %s472_s26 }
  0x10   :  { %570 = vmatprep.subr.mxu1 %v675_v1  ;;  %v134_v20 = vld [vmem:[%s854_s2 + $0x20] sm:$0xff]  ;;  %v133_v22 = vld [vmem:[%s854_s2 + $0x18] sm:$0xff]  ;;  %v132_v23 = vld [vmem:[%s854_s2 + $0x10] sm:$0xff]  ;;  %p654_p0 = scmp.ne.s32.totalorder %s472_s26, %s653_s27  ;;  %p659_p2 = scmp.lt.s32.totalorder %s653_s27, %s653_s27 }
  0x11   :  { %571 = vmatpush3.msra.mxu1 %v140_v11  ;;  %v25_v21 = vld [vmem:[%s852_s0] sm:$0xf]  ;;  %v131_v24 = vld [vmem:[%s854_s2 + $0x8] sm:$0xff] }
  0x12   :  { %549 = vmatpush3.bf16.msra.mxu0 %v647_v9  ;;  %572 = vmatprep.subr.mxu1 %v675_v1  ;;  %v130_v25 = vld [vmem:[%s854_s2] sm:$0xff]  ;;  %p660_p3 = por %p659_p2, %p658_p1 }
  0x13   :  { %550 = vmatprep.subr.bf16.mxu0 %v675_v1  ;;  %573 = vmatpush3.msra.mxu1 %v139_v13  ;;  %v146_v31 = vld [vmem:[%s855_s3] sm:$0xf] }
  0x14   :  { %574 = vmatprep.subr.mxu1 %v675_v1  ;;  %v491_v46 = vld [vmem:[%s856_s4] ss:$0 sm:$0xff]  ;;  %p661_p4 = pnand %p660_p3, %p654_p0 }
  0x15   :  { %575 = vmatpush3.msra.mxu1 %v138_v14  ;;  %v492_v50 = vld [vmem:[%s857_s5] ss:$0 sm:$0xff] }
  0x16   :  { %551 = vmatpush3.bf16.msra.mxu0 %v648_v12  ;;  %576 = vmatprep.subr.mxu1 %v675_v1 }
  0x17   :  { %552 = vmatprep.subr.bf16.mxu0 %v675_v1  ;;  %577 = vmatpush3.msra.mxu1 %v137_v16 }
  0x18   :  { %578 = vmatprep.subr.mxu1 %v675_v1 }
  0x19   :  { %579 = vmatpush3.msra.mxu1 %v136_v17 }
  0x1a   :  { %553 = vmatpush3.bf16.msra.mxu0 %v649_v15  ;;  %580 = vmatprep.subr.mxu1 %v675_v1 }
  0x1b   :  { %554 = vmatprep.subr.bf16.mxu0 %v675_v1  ;;  %581 = vmatpush3.msra.mxu1 %v135_v19 }
  0x1c   :  { %582 = vmatprep.subr.mxu1 %v675_v1 }
  0x1d   :  { %583 = vmatpush3.msra.mxu1 %v134_v20 }
  0x1e   :  { %555 = vmatpush3.bf16.msra.mxu0 %v650_v18  ;;  %584 = vmatprep.subr.mxu1 %v675_v1 }
  0x1f   :  { %595 = vmatprep.subr.mxu0 %v675_v1  ;;  %585 = vmatpush3.msra.mxu1 %v133_v22 }
  0x20   :  { %586 = vmatprep.subr.mxu1 %v675_v1 }
  0x21   :  { %557 = vmatmul.mubr.bf16.vlgmr.msra.gmra.mxu0 %v25_v21  ;;  %587 = vmatpush3.msra.mxu1 %v132_v23 }
  0x22   :  { %596 = vmatpush3.msra.mxu0 %v145_v4  ;;  %588 = vmatprep.subr.mxu1 %v675_v1 }
  0x23   :  { %597 = vmatprep.subr.mxu0 %v675_v1  ;;  %589 = vmatpush3.msra.mxu1 %v131_v24 }
  0x24   :  { %598 = vmatpush3.msra.mxu0 %v144_v5  ;;  %590 = vmatprep.subr.mxu1 %v675_v1 }
  0x25   :  { %599 = vmatprep.subr.mxu0 %v675_v1  ;;  %627 = vmatprep.mubr.msk.f32.mxu0 %vm676_vm0, %v675_v1 }
  0x26   :  { %600 = vmatpush3.msra.mxu0 %v143_v7  ;;  %591 = vmatpush3.msra.mxu1 %v130_v25 }
  0x27   :  { %601 = vmatprep.subr.mxu0 %v675_v1  ;;  %630 = vmatprep.subr.mxu1 %v675_v1 }
  0x28   :  { %602 = vmatpush3.msra.mxu0 %v142_v8 }
  0x29   :  { %603 = vmatprep.subr.mxu0 %v675_v1 }
  0x2a   :  { %604 = vmatpush3.msra.mxu0 %v141_v10 }
  0x2b   :  { %605 = vmatprep.subr.mxu0 %v675_v1 }
  0x2c   :  { %606 = vmatpush3.msra.mxu0 %v140_v11 }
  0x2d   :  { %607 = vmatprep.subr.mxu0 %v675_v1 }
  0x2e   :  { %608 = vmatpush3.msra.mxu0 %v139_v13 }
  0x2f   :  { %609 = vmatprep.subr.mxu0 %v675_v1 }
  0x30   :  { %610 = vmatpush3.msra.mxu0 %v138_v14 }
  0x31   :  { %611 = vmatprep.subr.mxu0 %v675_v1 }
  0x32   :  { %612 = vmatpush3.msra.mxu0 %v137_v16 }
  0x33   :  { %613 = vmatprep.subr.mxu0 %v675_v1 }
  0x34   :  { %614 = vmatpush3.msra.mxu0 %v136_v17 }
  0x35   :  { %615 = vmatprep.subr.mxu0 %v675_v1 }
  0x36   :  { %616 = vmatpush3.msra.mxu0 %v135_v19 }
  0x37   :  { %617 = vmatprep.subr.mxu0 %v675_v1 }
  0x38   :  { %618 = vmatpush3.msra.mxu0 %v134_v20 }
  0x39   :  { %619 = vmatprep.subr.mxu0 %v675_v1 }
  0x3a   :  { %620 = vmatpush3.msra.mxu0 %v133_v22 }
  0x3b   :  { %621 = vmatprep.subr.mxu0 %v675_v1 }
  0x3c   :  { %622 = vmatpush3.msra.mxu0 %v132_v23 }
  0x3d   :  { %623 = vmatprep.subr.mxu0 %v675_v1 }
  0x3e   :  { %624 = vmatpush3.msra.mxu0 %v131_v24 }
  0x3f   :  { %625 = vmatprep.subr.mxu0 %v675_v1 }
  0x40   :  { %626 = vmatpush3.msra.mxu0 %v130_v25 }
  0xe1   :  { %v124_v26 = vpop.f32.mrf.mxu0 }
  0xe2   :  { %v219_v27 = vmul.f32 %v124_v26, %v124_v26  ;;  %593 = vmatmul.mubr.f32.vlgmr.msra.gmra.mxu1 %v124_v26 }
  0xe3   :  { %v558_v28 = vpop.f32.mrf.mxu0  ;;  %632 = vmatprep.mubr.msk.f32.mxu1 %vm676_vm0, %v675_v1  ;;  %631 = vmatpush3.msk.msra.mxu1 %vm301_vm1, %v146_v31 }
  0xe4   :  { %628 = vmatmul.mubr.f32.vlgmr.msra.gmra.mxu0 %v219_v27  ;;  %635 = vmatprep.subr.mxu1 %v675_v1 }
  0xe5   :  { %v127_v29 = vpop.f32.mrf.mxu0 }
  0xe7   :  { %v559_v30 = vpop.f32.mrf.mxu0 }
 0x1a2   :  { %v215_v32 = vpop.f32.mrf.mxu1 }
 0x1a3   :  { %v290_v33 = vmul.f32 0.0625, %v215_v32 }
 0x1a4   :  { %v594_v34 = vpop.f32.mrf.mxu1  ;;  %v286_v35 = vpop.f32.mrf.mxu0 }
 0x1a5   :  { %v292_v36 = vmul.f32 %v290_v33, %v290_v33  ;;  %v291_v37 = vmul.f32 0.0625, %v286_v35  ;;  %633 = vmatmul.mubr.msk.f32.vlgmr.msra.gmra.mxu1 %vm297_vm2, %v290_v33 }
 0x1a6   :  { %v629_v38 = vpop.f32.mrf.mxu0  ;;  %636 = vmatpush3.msk.msra.mxu1 %vm301_vm1, %v146_v31  ;;  %637 = vmatprep.mubr.msk.f32.mxu1 %vm676_vm0, %v675_v1 }
 0x1a7   :  { %v293_v39 = vsub.f32 %v291_v37, %v292_v36 }
 0x1a9   :  { %v294_v40 = vmax.f32 %v293_v39, 0.0 }
 0x1ab   :  { %v295_v41 = vadd.f32 1e-05, %v294_v40 }
 0x1ad   :  { %651 = vrsqrt.f32 %v295_v41 }
 0x1ba   :  { %v652_v42 = vpop.eup %651 }
 0x1bb   :  { %638 = vmatmul.mubr.msk.f32.vlgmr.msra.gmra.mxu1 %vm297_vm2, %v652_v42 }
 0x265   :  { %v371_v43 = vpop.f32.mrf.mxu1 }
 0x266   :  { %v448_v45 = vsub.f32 %v124_v26, %v371_v43 }
 0x267   :  { %v634_v44 = vpop.f32.mrf.mxu1 }
 0x27b   :  { %v444_v47 = vpop.f32.mrf.mxu1 }
 0x27c   :  { %v449_v48 = vmul.f32 %v448_v45, %v444_v47 }
 0x27d   :  { %v639_v49 = vpop.f32.mrf.mxu1 }
 0x27e   :  { %v456_v51 = vmul.f32 %v491_v46, %v449_v48 }
 0x280   :  { %v463_v52 = vadd.f32 %v492_v50, %v456_v51 }
 0x282   :  { %464 = vst [vmem:[#allocation2] sm:$0xff] %v463_v52 }
 0x283   :  { %664 = shalt.err (!%p661_p4)
}
 0x284   :  { %474 = dma.vmem_to_hbm [thread:$0]  %s472_s26, 128, %s858_s6, [#allocation3]  }
 0x285   :  { %673 = dma.done.wait [#allocation3], 128  }
 0x286   :  { %674 = vsyncadd [#allocation3], 4294967168 }
 0x287   :  { %478 = vsyncpa [#allocation3], 1 }

</bundles_post_ra>
